<compile_context>
chip_gen: v6e
topology: v6e:2x2x1
jax: 0.10.0
libtpu: 0.0.40
codegen_flags: <defaults>
</compile_context>

<pallas_src>
import jax
import jax.numpy as jnp
from jax.experimental import pallas as pl
from jax.experimental.pallas import tpu as pltpu


def _mfm_kernel(x_ref, o_ref):
    # x_ref block: (n_blk, 2, c_blk, s_blk); axis 1 holds the two channel halves.
    a = x_ref[:, 0, :, :]
    b = x_ref[:, 1, :, :]
    o_ref[...] = jnp.maximum(a, b)


def _aligned_block(dim: int, align: int, cap_elems: int) -> int:
    """Pick a block size along one dim.

    Returns the full dim when dim <= align (a full-extent block dim is always a
    legal TPU block shape); otherwise the largest multiple of `align` that is
    <= min(dim, cap_elems) (and at least `align`).  Non-divisible dims are
    handled by a pl.cdiv grid with masked ragged tail blocks."""
    if dim <= align:
        return dim
    m = min(dim, max(align, cap_elems))
    return max(align, (m // align) * align)


def mfm(x: jax.Array, out_channels: int) -> jax.Array:
    """Max-Feature-Map: max(x[:, :C], x[:, C:]) over the channel axis (NCHW)."""
    n, c_in, h, w = x.shape
    assert c_in == 2 * out_channels, "MFM expects in_channels == 2 * out_channels"
    c = out_channels
    hw = h * w

    dtype_bytes = jnp.dtype(x.dtype).itemsize
    # Sublane alignment for the second-to-last block dim (8 for 4B, 16 for 2B, 32 for 1B).
    sub_align = {4: 8, 2: 16, 1: 32}.get(dtype_bytes, 8)

    # ~2 MiB output block (input block is 2x that since it carries both halves).
    buf_target = 2 << 20
    target_elems = max(1, buf_target // dtype_bytes)

    # Grow block dims last-dim -> channel -> batch so the output stays lane-dense
    # and the block spans multiple batch samples when C*H*W per sample is small.
    s_blk = _aligned_block(hw, 128, target_elems)
    c_blk = _aligned_block(c, sub_align, max(1, target_elems // s_blk))
    n_blk = max(1, min(n, target_elems // (s_blk * c_blk)))

    grid = (pl.cdiv(n, n_blk), pl.cdiv(c, c_blk), pl.cdiv(hw, s_blk))

    # Channel halves on a leading size-2 axis; one BlockSpec fetches both per step.
    x4 = x.reshape(n, 2, c, hw)

    in_spec = pl.BlockSpec((n_blk, 2, c_blk, s_blk), lambda i, j, k: (i, 0, j, k))
    out_spec = pl.BlockSpec((n_blk, c_blk, s_blk), lambda i, j, k: (i, j, k))

    cost = pl.CostEstimate(
        flops=n * c * hw,                            # one max per output element
        transcendentals=0,
        bytes_accessed=3 * n * c * hw * dtype_bytes,  # read both halves + write one
    )

    out3 = pl.pallas_call(
        _mfm_kernel,
        out_shape=jax.ShapeDtypeStruct((n, c, hw), x.dtype),
        grid_spec=pl.GridSpec(grid=grid, in_specs=[in_spec], out_specs=out_spec),
        compiler_params=pltpu.CompilerParams(
            dimension_semantics=("parallel", "parallel", "parallel"),
        ),
        cost_estimate=cost,
    )(x4)

    return out3.reshape(n, c, h, w)


def _check(x: jax.Array, out_channels: int) -> None:
    out = jax.block_until_ready(mfm(x, out_channels))
    ref = jnp.maximum(x[:, :out_channels, :, :], x[:, out_channels:, :, :])
    assert out.shape == ref.shape
    assert jnp.array_equal(out, ref), "MFM kernel mismatch vs reference"


if __name__ == "__main__":
    # MFM has no learnable parameters (the __init__ only stores out_channels).
    key = jax.random.PRNGKey(0)
    k1, k2 = jax.random.split(key)

    # Small, fully-aligned case: batch=2, out_channels=4 (in_channels=8), 16x16 spatial.
    _check(jax.random.normal(k1, (2, 8, 16, 16), dtype=jnp.float32), 4)

    # Ragged case: c=10 (not a multiple of 8) and hw=169 (not a multiple of 128)
    # exercises the cdiv-grid masked tail blocks on both of the last two block dims.
    _check(jax.random.normal(k2, (2, 20, 13, 13), dtype=jnp.float32), 10)

    print("KERNEL_OK")
</pallas_src>

<mosaic_0001>
module attributes {stable_mosaic.version = 11 : i64} {
  func.func @_mfm_kernel(%arg0: i32, %arg1: i32, %arg2: i32, %arg3: memref<2x2x4x256xf32, #tpu.memory_space<vmem>>, %arg4: memref<2x4x256xf32, #tpu.memory_space<vmem>>) attributes {dimension_semantics = [#tpu.dimension_semantics<parallel>, #tpu.dimension_semantics<parallel>, #tpu.dimension_semantics<parallel>], iteration_bounds = array<i64: 1, 1, 1>, scalar_prefetch = 0 : i64, scratch_operands = 0 : i64, tpu.core_type = #tpu.core_type<tc>, window_params = [{transform_indices = @transform_0, window_bounds = array<i64: 2, 2, 4, 256>}, {transform_indices = @transform_1, window_bounds = array<i64: 2, 4, 256>}]} {
    %c0 = arith.constant 0 : index
    %c0_0 = arith.constant 0 : index
    %c0_1 = arith.constant 0 : index
    %c0_2 = arith.constant 0 : index
    %0 = vector.load %arg3[%c0, %c0_0, %c0_1, %c0_2] : memref<2x2x4x256xf32, #tpu.memory_space<vmem>>, vector<2x1x4x256xf32>
    %1 = vector.shape_cast %0 : vector<2x1x4x256xf32> to vector<2x4x256xf32>
    %c0_3 = arith.constant 0 : index
    %c1 = arith.constant 1 : index
    %c0_4 = arith.constant 0 : index
    %c0_5 = arith.constant 0 : index
    %2 = vector.load %arg3[%c0_3, %c1, %c0_4, %c0_5] : memref<2x2x4x256xf32, #tpu.memory_space<vmem>>, vector<2x1x4x256xf32>
    %3 = vector.shape_cast %2 : vector<2x1x4x256xf32> to vector<2x4x256xf32>
    %4 = arith.maximumf %1, %3 : vector<2x4x256xf32>
    %c0_6 = arith.constant 0 : index
    %c0_7 = arith.constant 0 : index
    %c0_8 = arith.constant 0 : index
    %5 = vector.load %arg4[%c0_6, %c0_7, %c0_8] : memref<2x4x256xf32, #tpu.memory_space<vmem>>, vector<2x4x256xf32>
    tpu.vector_store %arg4[%c0_6, %c0_7, %c0_8], %4 {strides = array<i32>} : memref<2x4x256xf32, #tpu.memory_space<vmem>>, vector<2x4x256xf32>,
    return
  }
  func.func @transform_0(%arg0: i32, %arg1: i32, %arg2: i32) -> (i32, i32, i32, i32) {
    %c0_i32 = arith.constant 0 : i32
    %c0_i32_0 = arith.constant 0 : i32
    return %arg0, %c0_i32, %arg1, %arg2 : i32, i32, i32, i32
  }
  func.func @transform_1(%arg0: i32, %arg1: i32, %arg2: i32) -> (i32, i32, i32) {
    %c0_i32 = arith.constant 0 : i32
    return %arg0, %arg1, %arg2 : i32, i32, i32
  }
}

</mosaic_0001>

<bundles_post_ra>
// kernel: tpu_custom_call.1
= control target key start
LH: loop header
LB: loop body
LE: loop exit
PB: predicated region body
PF: predicated region fallthrough
CT: control target
= control target key end

     0   :  { %6 = vsyncpa [#allocation3], 0  ;;  %s117_s0 = inlined_call_operand.hbm [shape: f32[2,2,4,256], index: 0, kind: input, shape index: {}]   ;;  %s118_s1 = inlined_call_operand.hbm [shape: f32[2,4,256], index: 1, kind: output, shape index: {}]  }
   0x1   :  { %7 = vsyncpa [#allocation4], 0  ;;  %s97_s6 = smov [#allocation2]  }
   0x2   :  { %s13_s7 = sshll.u32 %s97_s6, 4  ;;  %s14_s7 = int_to_ptr.vmem [resolvable:$true] %s13_s7 }
   0x3   :  { %s61_s8 = scalar_lea.vmem %s14_s7, 512  ;;  %p66_p1 = scmp.lt.s32.totalorder %s14_s7, %s14_s7 }
   0x4   :  { %p62_p0 = scmp.ne.s32.totalorder %s14_s7, %s61_s8  ;;  %p67_p2 = scmp.lt.s32.totalorder %s61_s8, %s61_s8 }
   0x6   :  { %p68_p3 = por %p67_p2, %p66_p1 }
   0x8   :  { %p69_p4 = pnand %p68_p3, %p62_p0 }
   0xa   :  { %72 = shalt.err (!%p69_p4)
}
   0xb   :  { %s98_s9 = smov 128   ;;  %s99_s10 = smov 8  }
   0xc   :  { %19 = dma.hbm_to_vmem [thread:$0]  %s117_s0, 512, %s14_s7, [#allocation3], %s98_s9, %s98_s9, %s99_s10  }
   0xd   :  { %93 = dma.done.wait [#allocation3], 512  }
   0xe   :  { %94 = vsyncadd [#allocation3], 4294966784  ;;  %s100_s13 = smov [#allocation5]   ;;  %v23_v0 = vld [vmem:[#allocation2] sm:$0xff]  ;;  %v26_v1 = vld [vmem:[#allocation2 + $0x8] sm:$0xff] }
   0xf   :  { %s37_s14 = sshll.u32 %s100_s13, 4  ;;  %v24_v2 = vld [vmem:[#allocation2 + $0x10] sm:$0xff]  ;;  %v28_v3 = vmax.f32 %v23_v0, %v26_v1  ;;  %v27_v4 = vld [vmem:[#allocation2 + $0x18] sm:$0xff]  ;;  %s38_s14 = int_to_ptr.vmem [resolvable:$true] %s37_s14 }
  0x10   :  { %v29_v5 = vmax.f32 %v24_v2, %v27_v4  ;;  %s73_s15 = scalar_lea.vmem %s38_s14, 256  ;;  %p78_p6 = scmp.lt.s32.totalorder %s38_s14, %s38_s14 }
  0x11   :  { %30 = vst [vmem:[#allocation5] sm:$0xff] %v28_v3  ;;  %p74_p5 = scmp.ne.s32.totalorder %s38_s14, %s73_s15  ;;  %p79_p7 = scmp.lt.s32.totalorder %s73_s15, %s73_s15 }
  0x12   :  { %31 = vst [vmem:[#allocation5 + $0x8] sm:$0xff] %v29_v5 }
  0x13   :  { %p80_p8 = por %p79_p7, %p78_p6 }
  0x15   :  { %p81_p9 = pnand %p80_p8, %p74_p5 }
  0x17   :  { %84 = shalt.err (!%p81_p9)
}
  0x18   :  { %43 = dma.vmem_to_hbm [thread:$0]  %s38_s14, 256, %s118_s1, [#allocation4], %s98_s9, %s98_s9, %s99_s10  }
  0x19   :  { %95 = dma.done.wait [#allocation4], 256  }
  0x1a   :  { %96 = vsyncadd [#allocation4], 4294967040 }
  0x1b   :  { %47 = vsyncpa [#allocation3], 1 }
  0x1c   :  { %48 = vsyncpa [#allocation4], 1 }

</bundles_post_ra>
